<compile_context>
chip_gen: v7x
topology: tpu7x:2x2x1
jax: 0.10.0
libtpu: 0.0.40
codegen_flags: <defaults>
</compile_context>

<pallas_src>
import functools

import jax
import jax.numpy as jnp
from jax.experimental import pallas as pl
from jax.experimental.pallas import tpu as pltpu

_LANE = 128
_SUBLANE = 8


def _round_up(x, m):
    return ((x + m - 1) // m) * m


def _crossnet_fused_kernel(x_ref, m_ref, b_ref, o_ref, *, num_layers):
    # x_ref: [tb, Np]    batch tile (lane-dense, Np % 128 == 0)
    # m_ref: [L, Np, Np] fused per-layer cross matrix (V_l.T @ W_l.T)
    # b_ref: [L, 1, Np]  bias
    x0_f = x_ref[...].astype(jnp.float32)   # f32 for the elementwise FMA chain
    x_l = x0_f
    for layer in range(num_layers):          # small, static -> unrolled
        xm = jnp.dot(x_l, m_ref[layer], preferred_element_type=jnp.float32)
        x_l = x0_f * (xm + b_ref[layer]) + x_l
    o_ref[...] = x_l.astype(o_ref.dtype)


def _crossnet_lowrank_kernel(x_ref, vt_ref, wt_ref, b_ref, o_ref, *, num_layers):
    # Unfused fallback for large N (keeps the O(N*r) weight footprint).
    # x_ref: [tb, Np]; vt_ref: [L, Np, rp]; wt_ref: [L, rp, Np]; b_ref: [L, 1, Np]
    x0_f = x_ref[...].astype(jnp.float32)
    x_l = x0_f
    for layer in range(num_layers):
        xv = jnp.dot(x_l, vt_ref[layer], preferred_element_type=jnp.float32)
        xw = jnp.dot(xv, wt_ref[layer], preferred_element_type=jnp.float32)
        x_l = x0_f * (xw + b_ref[layer]) + x_l
    o_ref[...] = x_l.astype(o_ref.dtype)


def low_rank_crossnet(
    x,
    W,
    V,
    b,
    *,
    batch_tile=None,
    fuse_threshold=512,
    vmem_budget_bytes=48 << 20,  # conservative: fits v7x's 64 MiB physical VMEM
):
    """LowRankCrossNet forward.

    x: [B, N]; W: [L, N, r]; V: [L, r, N]; b: [L, N]  (PyTorch param shapes).
    Returns [B, N] with the same dtype as x.
    """
    B, N = x.shape
    L, _, r = W.shape
    x_itemsize = jnp.dtype(x.dtype).itemsize

    Np = _round_up(max(N, _LANE), _LANE)
    pad_n = Np - N
    fused = Np <= fuse_threshold

    # ---- wrapper-side parameter prep (glue, outside the kernel) -------------
    Vt = jnp.transpose(V, (0, 2, 1))                                  # [L, N, r]
    Wt = jnp.transpose(W, (0, 2, 1))                                  # [L, r, N]
    bias = jnp.pad(b.reshape(L, 1, N), ((0, 0), (0, 0), (0, pad_n)))  # [L, 1, Np]

    if fused:
        M = jnp.einsum(
            "lnr,lrm->lnm", Vt, Wt, preferred_element_type=jnp.float32
        ).astype(W.dtype)                                   # [L, N, N]
        M = jnp.pad(M, ((0, 0), (0, pad_n), (0, pad_n)))    # [L, Np, Np]
        param_arrays = (M, bias)
        param_specs = [
            pl.BlockSpec((L, Np, Np), lambda i: (0, 0, 0)),
            pl.BlockSpec((L, 1, Np), lambda i: (0, 0, 0)),
        ]
        kernel = functools.partial(_crossnet_fused_kernel, num_layers=L)
    else:
        rp = _round_up(max(r, _LANE), _LANE)                # lane-dense rank dim
        Vt_p = jnp.pad(Vt, ((0, 0), (0, pad_n), (0, rp - r)))   # [L, Np, rp]
        Wt_p = jnp.pad(Wt, ((0, 0), (0, rp - r), (0, pad_n)))   # [L, rp, Np]
        param_arrays = (Vt_p, Wt_p, bias)
        param_specs = [
            pl.BlockSpec((L, Np, rp), lambda i: (0, 0, 0)),
            pl.BlockSpec((L, rp, Np), lambda i: (0, 0, 0)),
            pl.BlockSpec((L, 1, Np), lambda i: (0, 0, 0)),
        ]
        kernel = functools.partial(_crossnet_lowrank_kernel, num_layers=L)

    # Constant index_map => params resident, but still double-buffered.
    param_bytes = 2 * sum(int(a.size) * jnp.dtype(a.dtype).itemsize
                          for a in param_arrays)

    # ---- batch tile: sized by VMEM budget ------------------------------------
    if batch_tile is None:
        # in/out double buffers + ~4 f32 working rows (x0_f, x_l, xm, slack)
        per_row = 2 * 2 * Np * x_itemsize + 4 * Np * 4
        avail = max(vmem_budget_bytes - param_bytes, _SUBLANE * per_row)
        batch_tile = int(avail // per_row)
    batch_tile = max(_SUBLANE, min(512, (batch_tile // _SUBLANE) * _SUBLANE))
    batch_tile = min(batch_tile, _round_up(B, _SUBLANE))
    B_pad = _round_up(B, batch_tile)

    # Keep >= 2 grid steps when possible (both v7x TCs busy, pipeline overlap).
    if B_pad // batch_tile < 2 and B_pad >= 2 * _SUBLANE:
        batch_tile = max(_SUBLANE, ((B_pad // 2) // _SUBLANE) * _SUBLANE)
        B_pad = _round_up(B, batch_tile)

    # ---- pad input (zero pad is inert through the recurrence) ---------------
    xp = x
    if pad_n or B_pad != B:
        xp = jnp.pad(x, ((0, B_pad - B), (0, pad_n)))

    out = pl.pallas_call(
        kernel,
        out_shape=jax.ShapeDtypeStruct((B_pad, Np), x.dtype),
        grid_spec=pltpu.PrefetchScalarGridSpec(
            num_scalar_prefetch=0,
            grid=(B_pad // batch_tile,),
            in_specs=[pl.BlockSpec((batch_tile, Np), lambda i: (i, 0))]
            + param_specs,
            out_specs=pl.BlockSpec((batch_tile, Np), lambda i: (i, 0)),
        ),
        compiler_params=pltpu.CompilerParams(
            dimension_semantics=("parallel",),
            vmem_limit_bytes=64 << 20,
        ),
    )(xp, *param_arrays)

    return out[:B, :N]


def _reference(x, W, V, b):
    """Pure-JAX reference matching the PyTorch forward exactly."""
    x0 = x.astype(jnp.float32)
    x_l = x0
    L = W.shape[0]
    for layer in range(L):
        x_l_v = x_l @ V[layer].T          # linear(x_l, V)   -> [B, r]
        x_l_w = x_l_v @ W[layer].T        # linear(x_l_v, W) -> [B, N]
        x_l = x0 * (x_l_w + b[layer]) + x_l
    return x_l.astype(x.dtype)


def _xavier_normal(key, shape):
    fan_in, fan_out = shape[1], shape[0]
    std = (2.0 / (fan_in + fan_out)) ** 0.5
    return std * jax.random.normal(key, shape, dtype=jnp.float32)


if __name__ == "__main__":
    batch_size = 16
    in_features = 32
    num_layers = 3
    low_rank = 4

    key = jax.random.PRNGKey(0)
    kx, *kparams = jax.random.split(key, 1 + 2 * num_layers)

    x = jax.random.normal(kx, (batch_size, in_features), dtype=jnp.float32)

    # Parameter shapes mirroring the module's __init__:
    #   W_kernels[l]: (in_features, low_rank), xavier_normal
    #   V_kernels[l]: (low_rank, in_features), xavier_normal
    #   bias[l]:      (in_features,), zeros
    W = jnp.stack([_xavier_normal(kparams[2 * l], (in_features, low_rank))
                   for l in range(num_layers)])                      # [L, N, r]
    V = jnp.stack([_xavier_normal(kparams[2 * l + 1], (low_rank, in_features))
                   for l in range(num_layers)])                      # [L, r, N]
    b = jnp.zeros((num_layers, in_features), dtype=jnp.float32)      # [L, N]

    ref = _reference(x, W, V, b)

    # Fused path (single matmul per layer; the common small/medium-N case).
    out = jax.block_until_ready(low_rank_crossnet(x, W, V, b))
    assert out.shape == (batch_size, in_features)
    assert jnp.allclose(out, ref, atol=1e-5, rtol=1e-5), "fused path mismatch"

    # Unfused low-rank fallback path (exercised by forcing fuse_threshold=0).
    out_lr = jax.block_until_ready(low_rank_crossnet(x, W, V, b, fuse_threshold=0))
    assert jnp.allclose(out_lr, ref, atol=1e-5, rtol=1e-5), "low-rank path mismatch"

    print("KERNEL_OK")
</pallas_src>

<mosaic_0001>
module attributes {stable_mosaic.version = 11 : i64} {
  func.func @_crossnet_fused_kernel(%arg0: i32, %arg1: memref<8x128xf32, #tpu.memory_space<vmem>>, %arg2: memref<3x128x128xf32, #tpu.memory_space<vmem>>, %arg3: memref<3x1x128xf32, #tpu.memory_space<vmem>>, %arg4: memref<8x128xf32, #tpu.memory_space<vmem>>) attributes {dimension_semantics = [#tpu.dimension_semantics<parallel>], iteration_bounds = array<i64: 2>, scalar_prefetch = 0 : i64, scratch_operands = 0 : i64, tpu.core_type = #tpu.core_type<tc>, window_params = [{transform_indices = @transform_0, window_bounds = array<i64: 8, 128>}, {pipeline_mode = #tpu.pipeline_mode<synchronous>, transform_indices = @transform_1, window_bounds = array<i64: 3, 128, 128>}, {pipeline_mode = #tpu.pipeline_mode<synchronous>, transform_indices = @transform_2, window_bounds = array<i64: 3, 1, 128>}, {transform_indices = @transform_3, window_bounds = array<i64: 8, 128>}]} {
    %c0 = arith.constant 0 : index
    %c0_0 = arith.constant 0 : index
    %0 = vector.load %arg1[%c0, %c0_0] : memref<8x128xf32, #tpu.memory_space<vmem>>, vector<8x128xf32>
    %c0_1 = arith.constant 0 : index
    %c0_2 = arith.constant 0 : index
    %c0_3 = arith.constant 0 : index
    %1 = vector.load %arg2[%c0_1, %c0_2, %c0_3] : memref<3x128x128xf32, #tpu.memory_space<vmem>>, vector<1x128x128xf32>
    %2 = vector.shape_cast %1 : vector<1x128x128xf32> to vector<128x128xf32>
    %cst = arith.constant dense<0.000000e+00> : vector<8x128xf32>
    %3 = tpu.matmul %0, %2, %cst {dimension_numbers = #tpu.dot_dimension_numbers<[1], [0], [0], [1], [0, 0, 1, 1], [], []>} : vector<8x128xf32>, vector<128x128xf32>, vector<8x128xf32> -> vector<8x128xf32>
    %c0_4 = arith.constant 0 : index
    %c0_5 = arith.constant 0 : index
    %c0_6 = arith.constant 0 : index
    %4 = vector.load %arg3[%c0_4, %c0_5, %c0_6] : memref<3x1x128xf32, #tpu.memory_space<vmem>>, vector<1x1x128xf32>
    %5 = vector.shape_cast %4 : vector<1x1x128xf32> to vector<1x128xf32>
    %6 = vector.broadcast %5 : vector<1x128xf32> to vector<8x128xf32>
    %7 = arith.addf %3, %6 : vector<8x128xf32>
    %8 = arith.mulf %0, %7 : vector<8x128xf32>
    %9 = arith.addf %8, %0 : vector<8x128xf32>
    %c1 = arith.constant 1 : index
    %c0_7 = arith.constant 0 : index
    %c0_8 = arith.constant 0 : index
    %10 = vector.load %arg2[%c1, %c0_7, %c0_8] : memref<3x128x128xf32, #tpu.memory_space<vmem>>, vector<1x128x128xf32>
    %11 = vector.shape_cast %10 : vector<1x128x128xf32> to vector<128x128xf32>
    %cst_9 = arith.constant dense<0.000000e+00> : vector<8x128xf32>
    %12 = tpu.matmul %9, %11, %cst_9 {dimension_numbers = #tpu.dot_dimension_numbers<[1], [0], [0], [1], [0, 0, 1, 1], [], []>} : vector<8x128xf32>, vector<128x128xf32>, vector<8x128xf32> -> vector<8x128xf32>
    %c1_10 = arith.constant 1 : index
    %c0_11 = arith.constant 0 : index
    %c0_12 = arith.constant 0 : index
    %13 = vector.load %arg3[%c1_10, %c0_11, %c0_12] : memref<3x1x128xf32, #tpu.memory_space<vmem>>, vector<1x1x128xf32>
    %14 = vector.shape_cast %13 : vector<1x1x128xf32> to vector<1x128xf32>
    %15 = vector.broadcast %14 : vector<1x128xf32> to vector<8x128xf32>
    %16 = arith.addf %12, %15 : vector<8x128xf32>
    %17 = arith.mulf %0, %16 : vector<8x128xf32>
    %18 = arith.addf %17, %9 : vector<8x128xf32>
    %c2 = arith.constant 2 : index
    %c0_13 = arith.constant 0 : index
    %c0_14 = arith.constant 0 : index
    %19 = vector.load %arg2[%c2, %c0_13, %c0_14] : memref<3x128x128xf32, #tpu.memory_space<vmem>>, vector<1x128x128xf32>
    %20 = vector.shape_cast %19 : vector<1x128x128xf32> to vector<128x128xf32>
    %cst_15 = arith.constant dense<0.000000e+00> : vector<8x128xf32>
    %21 = tpu.matmul %18, %20, %cst_15 {dimension_numbers = #tpu.dot_dimension_numbers<[1], [0], [0], [1], [0, 0, 1, 1], [], []>} : vector<8x128xf32>, vector<128x128xf32>, vector<8x128xf32> -> vector<8x128xf32>
    %c2_16 = arith.constant 2 : index
    %c0_17 = arith.constant 0 : index
    %c0_18 = arith.constant 0 : index
    %22 = vector.load %arg3[%c2_16, %c0_17, %c0_18] : memref<3x1x128xf32, #tpu.memory_space<vmem>>, vector<1x1x128xf32>
    %23 = vector.shape_cast %22 : vector<1x1x128xf32> to vector<1x128xf32>
    %24 = vector.broadcast %23 : vector<1x128xf32> to vector<8x128xf32>
    %25 = arith.addf %21, %24 : vector<8x128xf32>
    %26 = arith.mulf %0, %25 : vector<8x128xf32>
    %27 = arith.addf %26, %18 : vector<8x128xf32>
    %c0_19 = arith.constant 0 : index
    %c0_20 = arith.constant 0 : index
    %28 = vector.load %arg4[%c0_19, %c0_20] : memref<8x128xf32, #tpu.memory_space<vmem>>, vector<8x128xf32>
    tpu.vector_store %arg4[%c0_19, %c0_20], %27 {strides = array<i32>} : memref<8x128xf32, #tpu.memory_space<vmem>>, vector<8x128xf32>,
    return
  }
  func.func @transform_0(%arg0: i32) -> (i32, i32) {
    %c0_i32 = arith.constant 0 : i32
    %c0_i32_0 = arith.constant 0 : i32
    return %arg0, %c0_i32 : i32, i32
  }
  func.func @transform_1(%arg0: i32) -> (i32, i32, i32) {
    %c0_i32 = arith.constant 0 : i32
    %c0_i32_0 = arith.constant 0 : i32
    %c0_i32_1 = arith.constant 0 : i32
    %c0_i32_2 = arith.constant 0 : i32
    return %c0_i32, %c0_i32_0, %c0_i32_1 : i32, i32, i32
  }
  func.func @transform_2(%arg0: i32) -> (i32, i32, i32) {
    %c0_i32 = arith.constant 0 : i32
    %c0_i32_0 = arith.constant 0 : i32
    %c0_i32_1 = arith.constant 0 : i32
    %c0_i32_2 = arith.constant 0 : i32
    return %c0_i32, %c0_i32_0, %c0_i32_1 : i32, i32, i32
  }
  func.func @transform_3(%arg0: i32) -> (i32, i32) {
    %c0_i32 = arith.constant 0 : i32
    %c0_i32_0 = arith.constant 0 : i32
    return %arg0, %c0_i32 : i32, i32
  }
}

</mosaic_0001>

<bundles_post_ra>
// kernel: tpu_custom_call.1
= control target key start
LH: loop header
LB: loop body
LE: loop exit
PB: predicated region body
PF: predicated region fallthrough
CT: control target
= control target key end

     0   :  { %8 = vsyncpa [#allocation3], 0  ;;  %s1393_s0 = inlined_call_operand.hbm [shape: f32[16,128], index: 0, kind: input, shape index: {}]   ;;  %s1394_s1 = inlined_call_operand.hbm [shape: f32[3,128,128], index: 1, kind: input, shape index: {}]   ;;  %s1395_s2 = inlined_call_operand.hbm [shape: f32[3,1,128], index: 2, kind: input, shape index: {}]   ;;  %s1396_s3 = inlined_call_operand.hbm [shape: f32[16,128], index: 3, kind: output, shape index: {}]  }
   0x1   :  { %10 = vsyncpa [#allocation3 + $0x1], 0 }
   0x2   :  { %11 = vsyncpa [#allocation6], 0 }
   0x3   :  { %12 = vsyncpa [#allocation4], 0 }
   0x4   :  { %14 = vsyncpa [#allocation4 + $0x1], 0  ;;  %s1119_s12 = smov 0   ;;  %s1121_s13 = smov 0  }
   0x5   :  { %s1123_s14 = smov 0   ;;  %s1125_s15 = smov 0  }
   0x6 LB: > { %s1140_s16 = sadd.s32 4294967295, %s1086_s15   ;;  %s609_s17 = sadd.s32 4294967294, %s1086_s15   ;;  %s1086_s15 = sphi %s1125_s15, %s1416_s15   ;;  %s1082_s14 = sphi %s1123_s14, %s1415_s14   ;;  %s1078_s13 = sphi %s1121_s13, %s1414_s13   ;;  %s1074_s12 = sphi %s1119_s12, %s1413_s12  }
   0x7   : > { %p40_p0 = scmp.ne.s32.totalorder %s1078_s13, %s1074_s12  ;;  %p1397_p1 = scmp.eq.s32.totalorder %s1140_s16, 0 }
   0x8   : > { %p112_p3 = scmp.eq.s32.totalorder %s609_s17, 1  ;;  %p610_p5 = scmp.ge.s32.totalorder %s1086_s15, 1 }
   0x9   : > { %p1149_p4 = por %p1397_p1, %p40_p0  ;;  %p119_p7 = scmp.lt.s32.totalorder %s1086_s15, 3 }
   0xa   : > { %p1154_p6 = por %p112_p3, %p40_p0  ;;  %s1088_s21 = smov [#allocation5]  }
   0xb   : > { %s1400_s18 = scalar_select %p1149_p4, 1, 0 }
   0xc   : > { %s1401_s19 = scalar_select %p1154_p6, 1, 0 }
   0xd   : > { %p1159_p8 = pnand %p610_p5, %p119_p7  ;;  %s131_s22 = sshll.u32 %s1088_s21, 4  ;;  %s1163_s22 = int_to_ptr.vmem [resolvable:$true] %s131_s22 }
   0xe   : > { %s1089_s24 = smov [#allocation7]   ;;  %s930_s28 = scalar_lea.hbm %s1394_s1, 6144 }
   0xf   : > { %p868_p9 = pneg %p1159_p8  ;;  %s144_s25 = sshll.u32 %s1089_s24, 4  ;;  %s1174_s25 = int_to_ptr.vmem [resolvable:$true] %s144_s25 }
  0x10   : > { %p931_p12 = scmp.ne.s32.totalorder %s1394_s1, %s930_s28  ;;  %p937_p5 = scmp.lt.u32.totalorder %s930_s28, %s1394_s1 }
  0x11   : > { %p1170_p11 = pnand %p868_p9, %p1397_p1 }
  0x13   : > { %p932_p13 = pneg %p1170_p11 }
  0x15   : > { %p933_p0 = pnand %p932_p13, %p931_p12 }
  0x17   : > { %p934_p3 = pneg %p933_p0 }
  0x19   : > { %p939_p7 = pnand %p937_p5, %p934_p3 }
  0x1b   : > { %942 = shalt.err (!%p939_p7)
}
  0x1c   : > { %s943_s6 = scalar_lea.vmem %s1163_s22, 6144  ;;  %p951_p2 = scmp.lt.s32.totalorder %s1163_s22, %s1163_s22 }
  0x1d   : > { %p944_p9 = scmp.ne.s32.totalorder %s1163_s22, %s943_s6  ;;  %p952_p12 = scmp.lt.s32.totalorder %s943_s6, %s943_s6 }
  0x1f   : > { %p946_p10 = pnand %p944_p9, %p932_p13  ;;  %p953_p0 = por %p952_p12, %p951_p2 }
  0x21   : > { %p947_p1 = pneg %p946_p10 }
  0x23   : > { %p954_p6 = pnand %p953_p0, %p947_p1 }
  0x25   : > { %957 = shalt.err (!%p954_p6)
}
  0x26   : > { %s1090_s7 = smov 128   ;;  %s1091_s8 = smov 8  }
  0x27   : > { %871 = dma.hbm_to_vmem [thread:$0]  (!%p1170_p11), %s1394_s1, 6144, %s1163_s22, [#allocation6], %s1090_s7, %s1090_s7, %s1091_s8  }
  0x28   : > { %s958_s21 = scalar_lea.hbm %s1395_s2, 48 }
  0x29   : > { %p959_p2 = scmp.ne.s32.totalorder %s1395_s2, %s958_s21  ;;  %p965_p10 = scmp.lt.u32.totalorder %s958_s21, %s1395_s2 }
  0x2b   : > { %p961_p1 = pnand %p959_p2, %p932_p13 }
  0x2d   : > { %p962_p6 = pneg %p961_p1 }
  0x2f   : > { %p967_p3 = pnand %p965_p10, %p962_p6 }
  0x31   : > { %970 = shalt.err (!%p967_p3)
}
  0x32   : > { %s971_s22 = scalar_lea.vmem %s1174_s25, 48  ;;  %s978_s29 = scalar_lea.vmem %s1174_s25, 64 }
  0x33   : > { %p972_p5 = scmp.ne.s32.totalorder %s1174_s25, %s971_s22  ;;  %p979_p12 = scmp.lt.s32.totalorder %s1174_s25, %s1174_s25 }
  0x34   : > { %p980_p0 = scmp.lt.s32.totalorder %s978_s29, %s971_s22 }
  0x35   : > { %p974_p7 = pnand %p972_p5, %p932_p13 }
  0x36   : > { %p981_p2 = por %p980_p0, %p979_p12 }
  0x37   : > { %p975_p9 = pneg %p974_p7 }
  0x39   : > { %p982_p1 = pnand %p981_p2, %p975_p9 }
  0x3b   : > { %985 = shalt.err (!%p982_p1)
}
  0x3c   : > { %s1092_s30 = smov 16   ;;  %s1093_s4 = smov 1  }
  0x3d   : > { %874 = dma.hbm_to_vmem [thread:$0]  (!%p1170_p11), %s1395_s2, 48, %s1174_s25, [#allocation6], %s1092_s30, %s1092_s30, %s1093_s4  }
  0x3e   : > { %s1230_s7 = sadd.s32 1, %s1086_s15   ;;  %s27_s9 = sadd.s32 1, %s1082_s14 }
  0x3f   : > { %s24_s8 = ssub.s32 %s1086_s15, %s1230_s7  ;;  %p34_p6 = scmp.ne.s32.totalorder %s1082_s14, %s1078_s13 }
  0x40   : > { %p25_p13 = scmp.eq.s32.totalorder %s24_s8, 0  ;;  %p35_p10 = scmp.eq.s32.totalorder %s1086_s15, 0 }
  0x41   : > { %p1404_p5 = scmp.eq.s32.totalorder %s1140_s16, 1  ;;  %p885_p9 = scmp.lt.s32.totalorder %s1086_s15, 2 }
  0x42   : > { %s1239_s10 = scalar_select %p25_p13, %s1082_s14, %s27_s9  }
  0x43   : > { %p36_p3 = por %p35_p10, %p34_p6  ;;  %p1243_p7 = por %p1404_p5, %p34_p6 }
  0x44   : > { %s158_s23 = sand.u32 1, %s1082_s14   ;;  %s615_s25 = sshll.u32 %s1086_s15, 7 }
  0x45   : > { %s1405_s11 = scalar_select %p1243_p7, 1, 0 }
  0x46   : > { %s614_s17 = sshll.u32 %s158_s23, 3  ;;  %s1253_s26 = scalar_lea.hbm %s1393_s0, %s615_s25 }
  0x47   : > { %s162_s27 = scalar_lea.vmem [#allocation2], %s614_s17  ;;  %p1257_p11 = pnand %p885_p9, %p36_p3 }
  0x48   : > { %s169_s28 = sshll.u32 %s162_s27, 4  ;;  %s159_s29 = scalar_lea.sflag [#allocation3], %s158_s23  ;;  %s1255_s28 = int_to_ptr.vmem [resolvable:$true] %s169_s28 }
  0x49   : > { %s986_s30 = scalar_lea.hbm %s1253_s26, 128  ;;  %p988_p0 = pneg %p1257_p11 }
  0x4a   : > { %p987_p12 = scmp.ne.s32.totalorder %s1253_s26, %s986_s30  ;;  %s991_s6 = scalar_lea.hbm %s1393_s0, 256 }
  0x4b   : > { %p992_p13 = scmp.lt.u32.totalorder %s1253_s26, %s1393_s0  ;;  %p993_p6 = scmp.lt.u32.totalorder %s991_s6, %s986_s30 }
  0x4c   : > { %p989_p2 = pnand %p988_p0, %p987_p12  ;;  %p995_p3 = scmp.lt.u32.totalorder %s986_s30, %s1253_s26 }
  0x4d   : > { %p994_p10 = por %p993_p6, %p992_p13 }
  0x4e   : > { %p990_p1 = pneg %p989_p2 }
  0x4f   : > { %p996_p5 = por %p995_p3, %p994_p10 }
  0x51   : > { %p997_p9 = pnand %p996_p5, %p990_p1 }
  0x53   : > { %1000 = shalt.err (!%p997_p9)
}
  0x54   : > { %s1001_s23 = scalar_lea.vmem %s1255_s28, 128  ;;  %s1094_s17 = smov [#allocation2]  }
  0x55   : > { %p1002_p12 = scmp.ne.s32.totalorder %s1255_s28, %s1001_s23  ;;  %s1006_s25 = sshll.u32 %s1094_s17, 4  ;;  %s1007_s25 = int_to_ptr.vmem [resolvable:$false] %s1006_s25 }
  0x56   : > { %s1008_s21 = scalar_lea.vmem %s1007_s25, 256  ;;  %p1009_p4 = scmp.lt.s32.totalorder %s1255_s28, %s1007_s25 }
  0x57   : > { %p1004_p2 = pnand %p1002_p12, %p988_p0  ;;  %p1010_p13 = scmp.lt.s32.totalorder %s1008_s21, %s1001_s23 }
  0x59   : > { %p1005_p7 = pneg %p1004_p2  ;;  %p1011_p6 = por %p1010_p13, %p1009_p4 }
  0x5b   : > { %p1012_p10 = pnand %p1011_p6, %p1005_p7 }
  0x5d   : > { %1015 = shalt.err (!%p1012_p10)
}
  0x5e   : > { %878 = dma.hbm_to_vmem [thread:$0]  (!%p1257_p11), %s1253_s26, 128, %s1255_s28, %s159_s29  }
  0x5f   : > { %178 = sbr.rel (%p1159_p8) target bundleno = 808 (0x328), region = 32  ;;  %s1289_s24 = sand.u32 (!%p1159_p8), 1, %s1078_s13  }
  0x60   : > { %s617_s27 = sshll.u32 (!%p1159_p8), %s1289_s24, 3  ;;  %s181_s30 = scalar_lea.sflag (!%p1159_p8), [#allocation3], %s1289_s24 }
  0x61   : > { %s1295_s4 = scalar_lea.vmem (!%p1159_p8), [#allocation2], %s617_s27  ;;  %p1407_p4 = scmp.ne.s32.totalorder (!%p1159_p8), %s1400_s18, 0 }
  0x66   : > { %1061 = dma.done.wait (%p1407_p4), %s181_s30, 128  }
  0x67   : > { %1063 = vsyncadd (%p1407_p4), %s181_s30, 4294967168  ;;  %p1408_p7 = scmp.eq.s32.totalorder %s1140_s16, 0 }
  0x69   : > { %1065 = dma.done.wait (%p1408_p7), [#allocation6], 6192   ;;  %p1409_p8 = pmov %p1408_p7 }
  0x6a   : > { %v1095_v0 = vmov 0.0|0.0   ;;  %vm1096_vm0 = vmmov 0   ;;  %v1097_v1 = vmov 0.0   ;;  %v216_v2 = vld [vmem:[#allocation5] sm:$0xff]  ;;  %v217_v3 = vld [vmem:[#allocation5 + $0x8] sm:$0xff]  ;;  %v218_v4 = vld [vmem:[#allocation5 + $0x10] sm:$0xff] }
  0x6b   : > { %1067 = vsyncadd (%p1409_p8), [#allocation6], 4294961104  ;;  %784 = vmatprep.subr.bf16.mxu0 %v1095_v0  ;;  %711 = vmatprep.mubr.msk.f32.mxu0 %vm1096_vm0, %v1097_v1  ;;  %v785_v5 = vpack.c.bf16 %v217_v3, %v216_v2  ;;  %v219_v6 = vld [vmem:[#allocation5 + $0x18] sm:$0xff]  ;;  %v220_v8 = vld [vmem:[#allocation5 + $0x20] sm:$0xff]  ;;  %s625_s18 = sshll.u32 %s1140_s16, 7  ;;  %s214_s20 = scalar_lea.vmem [#allocation8], %s617_s27 }
  0x6c   : > { %808 = vmatprep.subr.bf16.mxu1 %v1095_v0  ;;  %746 = vmatprep.mubr.msk.f32.mxu1 %vm1096_vm0, %v1097_v1  ;;  %v788_v7 = vpack.c.bf16 %v219_v6, %v218_v4  ;;  %v221_v9 = vld [vmem:[#allocation5 + $0x28] sm:$0xff]  ;;  %v312_v10 = vld [vmem:[#allocation5 + $0x80] sm:$0xff]  ;;  %v314_v12 = vld [vmem:[#allocation5 + $0x90] sm:$0xff]  ;;  %s520_s26 = sshll.u32 %s214_s20, 4  ;;  %s1349_s29 = scalar_lea.hbm %s1396_s3, %s625_s18  ;;  %s1351_s26 = int_to_ptr.vmem [resolvable:$true] %s520_s26 }
  0x6d   : > { %786 = vmatpush3.bf16.msra.mxu0 %v785_v5  ;;  %v313_v11 = vld [vmem:[#allocation5 + $0x88] sm:$0xff]  ;;  %v315_v13 = vld [vmem:[#allocation5 + $0x98] sm:$0xff]  ;;  %v791_v14 = vpack.c.bf16 %v221_v9, %v220_v8  ;;  %v222_v16 = vld [vmem:[#allocation5 + $0x30] sm:$0xff]  ;;  %s507_s5 = scalar_lea.sflag [#allocation4], %s1289_s24  ;;  %s1016_s6 = scalar_lea.vmem %s1351_s26, 128 }
  0x6e   : > { %787 = vmatprep.subr.bf16.mxu0 %v1095_v0  ;;  %v809_v15 = vpack.c.bf16 %v313_v11, %v312_v10  ;;  %v223_v17 = vld [vmem:[#allocation5 + $0x38] sm:$0xff]  ;;  %v812_v18 = vpack.c.bf16 %v315_v13, %v314_v12  ;;  %v316_v19 = vld [vmem:[#allocation5 + $0xa0] sm:$0xff]  ;;  %v317_v20 = vld [vmem:[#allocation5 + $0xa8] sm:$0xff]  ;;  %p1017_p11 = scmp.ne.s32.totalorder %s1351_s26, %s1016_s6  ;;  %p1410_p0 = scmp.ne.s32.totalorder %s1405_s11, 0 }
  0x6f   : > { %v794_v21 = vpack.c.bf16 %v223_v17, %v222_v16  ;;  %v224_v22 = vld [vmem:[#allocation5 + $0x40] sm:$0xff]  ;;  %v225_v23 = vld [vmem:[#allocation5 + $0x48] sm:$0xff]  ;;  %v815_v24 = vpack.c.bf16 %v317_v20, %v316_v19  ;;  %v318_v25 = vld [vmem:[#allocation5 + $0xb0] sm:$0xff]  ;;  %s1098_s16 = smov [#allocation8]  }
  0x70   : > { %810 = vmatpush3.bf16.msra.mxu1 %v809_v15  ;;  %v319_v26 = vld [vmem:[#allocation5 + $0xb8] sm:$0xff]  ;;  %v797_v27 = vpack.c.bf16 %v225_v23, %v224_v22  ;;  %v226_v28 = vld [vmem:[#allocation5 + $0x50] sm:$0xff]  ;;  %v320_v31 = vld [vmem:[#allocation5 + $0xc0] sm:$0xff]  ;;  %p1018_p1 = pnand %p1017_p11, %p1410_p0  ;;  %s1020_s8 = sshll.u32 %s1098_s16, 4  ;;  %s1021_s8 = int_to_ptr.vmem [resolvable:$false] %s1020_s8 }
  0x71   : > { %789 = vmatpush3.bf16.msra.mxu0 %v788_v7  ;;  %811 = vmatprep.subr.bf16.mxu1 %v1095_v0  ;;  %v227_v29 = vld [vmem:[#allocation5 + $0x58] sm:$0xff]  ;;  %v818_v30 = vpack.c.bf16 %v319_v26, %v318_v25  ;;  %v321_v32 = vld [vmem:[#allocation5 + $0xc8] sm:$0xff]  ;;  %v228_v34 = vld [vmem:[#allocation5 + $0x60] sm:$0xff]  ;;  %s1022_s9 = scalar_lea.vmem %s1021_s8, 256  ;;  %p1023_p5 = scmp.lt.s32.totalorder %s1351_s26, %s1021_s8 }
  0x72   : > { %790 = vmatprep.subr.bf16.mxu0 %v1095_v0  ;;  %v800_v33 = vpack.c.bf16 %v227_v29, %v226_v28  ;;  %v229_v35 = vld [vmem:[#allocation5 + $0x68] sm:$0xff]  ;;  %v821_v36 = vpack.c.bf16 %v321_v32, %v320_v31  ;;  %v322_v37 = vld [vmem:[#allocation5 + $0xd0] sm:$0xff]  ;;  %v323_v38 = vld [vmem:[#allocation5 + $0xd8] sm:$0xff]  ;;  %p1019_p3 = pneg %p1018_p1  ;;  %p1024_p9 = scmp.lt.s32.totalorder %s1022_s9, %s1016_s6 }
  0x73   : > { %v803_v39 = vpack.c.bf16 %v229_v35, %v228_v34  ;;  %v230_v40 = vld [vmem:[#allocation5 + $0x70] sm:$0xff]  ;;  %v231_v41 = vld [vmem:[#allocation5 + $0x78] sm:$0xff]  ;;  %v824_v42 = vpack.c.bf16 %v323_v38, %v322_v37  ;;  %v324_v45 = vld [vmem:[#allocation5 + $0xe0] sm:$0xff] }
  0x74   : > { %813 = vmatpush3.bf16.msra.mxu1 %v812_v18  ;;  %v806_v43 = vpack.c.bf16 %v231_v41, %v230_v40  ;;  %v1325_v44 = vld [vmem:[%s1295_s4] sm:$0xff]  ;;  %v325_v46 = vld [vmem:[#allocation5 + $0xe8] sm:$0xff]  ;;  %v409_v51 = vld [vmem:[#allocation5 + $0x100] sm:$0xff]  ;;  %p1025_p12 = por %p1024_p9, %p1023_p5 }
  0x75   : > { %792 = vmatpush3.bf16.msra.mxu0 %v791_v14  ;;  %814 = vmatprep.subr.bf16.mxu1 %v1095_v0  ;;  %v827_v47 = vpack.c.bf16 %v325_v46, %v324_v45  ;;  %v326_v48 = vld [vmem:[#allocation5 + $0xf0] sm:$0xff]  ;;  %v327_v49 = vld [vmem:[#allocation5 + $0xf8] sm:$0xff]  ;;  %v410_v52 = vld [vmem:[#allocation5 + $0x108] sm:$0xff] }
  0x76   : > { %793 = vmatprep.subr.bf16.mxu0 %v1095_v0  ;;  %v830_v50 = vpack.c.bf16 %v327_v49, %v326_v48  ;;  %v411_v53 = vld [vmem:[#allocation5 + $0x110] sm:$0xff]  ;;  %v833_v54 = vpack.c.bf16 %v410_v52, %v409_v51  ;;  %v412_v55 = vld [vmem:[#allocation5 + $0x118] sm:$0xff]  ;;  %v413_v57 = vld [vmem:[#allocation5 + $0x120] sm:$0xff]  ;;  %p1026_p2 = pnand %p1025_p12, %p1019_p3 }
  0x77   : > { %v836_v56 = vpack.c.bf16 %v412_v55, %v411_v53  ;;  %v414_v58 = vld [vmem:[#allocation5 + $0x128] sm:$0xff]  ;;  %v415_v60 = vld [vmem:[#allocation5 + $0x130] sm:$0xff]  ;;  %v416_v61 = vld [vmem:[#allocation5 + $0x138] sm:$0xff] }
  0x78   : > { %816 = vmatpush3.bf16.msra.mxu1 %v815_v24  ;;  %v839_v59 = vpack.c.bf16 %v414_v58, %v413_v57  ;;  %v842_v62 = vpack.c.bf16 %v416_v61, %v415_v60  ;;  %v417_v63 = vld [vmem:[#allocation5 + $0x140] sm:$0xff]  ;;  %v419_v3 = vld [vmem:[#allocation5 + $0x150] sm:$0xff]  ;;  %v420_v4 = vld [vmem:[#allocation5 + $0x158] sm:$0xff] }
  0x79   : > { %795 = vmatpush3.bf16.msra.mxu0 %v794_v21  ;;  %817 = vmatprep.subr.bf16.mxu1 %v1095_v0  ;;  %v848_v5 = vpack.c.bf16 %v420_v4, %v419_v3  ;;  %v621_v6 = vld [vmem:[#allocation7] ss:$0 sm:$0xff]  ;;  %v422_v13 = vld [vmem:[#allocation5 + $0x168] sm:$0xff]  ;;  %v423_v15 = vld [vmem:[#allocation5 + $0x170] sm:$0xff] }
  0x7a   : > { %796 = vmatprep.subr.bf16.mxu0 %v1095_v0  ;;  %v421_v12 = vld [vmem:[#allocation5 + $0x160] sm:$0xff]  ;;  %v424_v16 = vld [vmem:[#allocation5 + $0x178] sm:$0xff] }
  0x7b   : > { %v851_v14 = vpack.c.bf16 %v422_v13, %v421_v12  ;;  %v854_v17 = vpack.c.bf16 %v424_v16, %v423_v15  ;;  %v622_v18 = vld [vmem:[#allocation7 + $0x1] ss:$0 sm:$0xff]  ;;  %v623_v24 = vld [vmem:[#allocation7 + $0x2] ss:$0 sm:$0xff] }
  0x7c   : > { %819 = vmatpush3.bf16.msra.mxu1 %v818_v30 }
  0x7d   : > { %798 = vmatpush3.bf16.msra.mxu0 %v797_v27  ;;  %820 = vmatprep.subr.bf16.mxu1 %v1095_v0 }
  0x7e   : > { %799 = vmatprep.subr.bf16.mxu0 %v1095_v0 }
  0x80   : > { %822 = vmatpush3.bf16.msra.mxu1 %v821_v36 }
  0x81   : > { %801 = vmatpush3.bf16.msra.mxu0 %v800_v33  ;;  %823 = vmatprep.subr.bf16.mxu1 %v1095_v0 }
  0x82   : > { %802 = vmatprep.subr.bf16.mxu0 %v1095_v0 }
  0x84   : > { %825 = vmatpush3.bf16.msra.mxu1 %v824_v42 }
  0x85   : > { %804 = vmatpush3.bf16.msra.mxu0 %v803_v39  ;;  %826 = vmatprep.subr.bf16.mxu1 %v1095_v0 }
  0x86   : > { %805 = vmatprep.subr.bf16.mxu0 %v1095_v0 }
  0x88   : > { %828 = vmatpush3.bf16.msra.mxu1 %v827_v47 }
  0x89   : > { %807 = vmatpush3.bf16.msra.mxu0 %v806_v43  ;;  %829 = vmatprep.subr.bf16.mxu1 %v1095_v0 }
  0x8a   : > { %832 = vmatprep.subr.bf16.mxu0 %v1095_v0 }
  0x8c   : > { %712 = vmatmul.mubr.f32.vlgmr.msra.gmra.mrb[0].mxu0 %v1325_v44  ;;  %831 = vmatpush3.bf16.msra.mxu1 %v830_v50 }
  0x8d   : > { %781 = vmatprep.mubr.msk.f32.mxu0 %vm1096_vm0, %v1097_v1  ;;  %834 = vmatpush3.bf16.msra.mxu0 %v833_v54  ;;  %v418_v1 = vld [vmem:[#allocation5 + $0x148] sm:$0xff] }
  0x8e   : > { %835 = vmatprep.subr.bf16.mxu0 %v1095_v0  ;;  %v845_v2 = vpack.c.bf16 %v418_v1, %v417_v63 }
  0x91   : > { %837 = vmatpush3.bf16.msra.mxu0 %v836_v56 }
  0x92   : > { %838 = vmatprep.subr.bf16.mxu0 %v1095_v0 }
  0x95   : > { %840 = vmatpush3.bf16.msra.mxu0 %v839_v59 }
  0x96   : > { %841 = vmatprep.subr.bf16.mxu0 %v1095_v0 }
  0x99   : > { %843 = vmatpush3.bf16.msra.mxu0 %v842_v62 }
  0x9a   : > { %844 = vmatprep.subr.bf16.mxu0 %v1095_v0 }
  0x9d   : > { %846 = vmatpush3.bf16.msra.mxu0 %v845_v2 }
  0x9e   : > { %847 = vmatprep.subr.bf16.mxu0 %v1095_v0 }
  0xa1   : > { %849 = vmatpush3.bf16.msra.mxu0 %v848_v5 }
  0xa2   : > { %850 = vmatprep.subr.bf16.mxu0 %v1095_v0 }
  0xa5   : > { %852 = vmatpush3.bf16.msra.mxu0 %v851_v14 }
  0xa6   : > { %853 = vmatprep.subr.bf16.mxu0 %v1095_v0 }
  0xa9   : > { %855 = vmatpush3.bf16.msra.mxu0 %v854_v17 }
 0x15f   : > { %v305_v7 = vpop.f32.mrb[0].mxu0 }
 0x160   : > { %v306_v8 = vadd.f32 %v621_v6, %v305_v7  ;;  %v713_v9 = vpop.f32.mrb[1].mxu0 }
 0x162   : > { %v309_v10 = vmul.f32 %v306_v8, %v1325_v44 }
 0x164   : > { %v310_v11 = vadd.f32 %v309_v10, %v1325_v44 }
 0x166   : > { %747 = vmatmul.mubr.f32.vlgmr.msra.gmra.mrb[0].mxu1 %v310_v11 }
 0x239   : > { %v402_v19 = vpop.f32.mrb[0].mxu1 }
 0x23a   : > { %v403_v20 = vadd.f32 %v622_v18, %v402_v19  ;;  %v748_v21 = vpop.f32.mrb[1].mxu1 }
 0x23c   : > { %v406_v22 = vmul.f32 %v403_v20, %v1325_v44 }
 0x23e   : > { %v407_v23 = vadd.f32 %v406_v22, %v310_v11 }
 0x240   : > { %782 = vmatmul.mubr.f32.vlgmr.msra.gmra.mrb[2].mxu0 %v407_v23 }
 0x313   : > { %v499_v25 = vpop.f32.mrb[2].mxu0 }
 0x314   : > { %v500_v26 = vadd.f32 %v623_v24, %v499_v25  ;;  %v783_v0 = vpop.f32.mrb[3].mxu0 }
 0x316   : > { %v503_v27 = vmul.f32 %v500_v26, %v1325_v44 }
 0x318   : > { %v504_v28 = vadd.f32 %v503_v27, %v407_v23 }
 0x31a   : > { %505 = vst [vmem:[%s214_s20] sm:$0xff] %v504_v28 }
 0x31b   : > { %1029 = shalt.err (!%p1026_p2)
}
 0x31c   : > { %s1030_s23 = scalar_lea.hbm %s1349_s29, 128  ;;  %s1034_s21 = scalar_lea.hbm %s1396_s3, 256 }
 0x31d   : > { %p1031_p13 = scmp.ne.s32.totalorder %s1349_s29, %s1030_s23  ;;  %p1035_p4 = scmp.lt.u32.totalorder %s1349_s29, %s1396_s3 }
 0x31e   : > { %p1036_p7 = scmp.lt.u32.totalorder %s1034_s21, %s1030_s23  ;;  %p1038_p11 = scmp.lt.u32.totalorder %s1030_s23, %s1349_s29 }
 0x31f   : > { %p1032_p6 = pnand %p1031_p13, %p1410_p0 }
 0x320   : > { %p1037_p8 = por %p1036_p7, %p1035_p4 }
 0x321   : > { %p1033_p10 = pneg %p1032_p6 }
 0x322   : > { %p1039_p1 = por %p1038_p11, %p1037_p8 }
 0x324   : > { %p1040_p3 = pnand %p1039_p1, %p1033_p10 }
 0x326   : > { %1043 = shalt.err (!%p1040_p3)
}
 0x327   : > { %866 = dma.vmem_to_hbm [thread:$0]  (%p1410_p0), %s1351_s26, 128, %s1349_s29, %s507_s5  }
 0x328 PF: > { %s532_s30 = sand.u32 1, %s1074_s12   ;;  %p1411_p5 = scmp.ne.s32.totalorder %s1401_s19, 0 }
 0x329   : > { %p1412_p9 = scmp.ge.s32.totalorder %s1086_s15, 2  ;;  %s533_s4 = scalar_lea.sflag [#allocation4], %s532_s30 }
 0x32b   : > { %p880_p12 = pnand %p1412_p9, %p1411_p5 }
 0x32d   : > { %1069 = dma.done.wait (!%p880_p12), %s533_s4, 128  }
 0x32e   : > { %1071 = vsyncadd (!%p880_p12), %s533_s4, 4294967168  ;;  %p17_p2 = scmp.ge.s32.totalorder %s1230_s7, 4   ;;  %s1413_s12 = smov %s1078_s13 }
 0x32f   : > { %s1414_s13 = smov %s1082_s14  ;;  %s1415_s14 = smov %s1239_s10 }
 0x330   : > { %s1416_s15 = smov %s1230_s7  ;;  %19 = sbr.rel (!%p17_p2) target bundleno = 6 (0x6), region = 89 }
 0x337   :  { %538 = vsyncpa [#allocation3], 1 }
 0x338   :  { %540 = vsyncpa [#allocation3 + $0x1], 1 }
 0x339   :  { %541 = vsyncpa [#allocation6], 1 }
 0x33a   :  { %542 = vsyncpa [#allocation4], 1 }
 0x33b   :  { %544 = vsyncpa [#allocation4 + $0x1], 1 }

</bundles_post_ra>
